<compile_context>
chip_gen: v5e
topology: v5e:2x2
jax: 0.10.0
libtpu: 0.0.40
codegen_flags: <defaults>
</compile_context>

<pallas_src>
import functools
import math

import jax
import jax.numpy as jnp
from jax import lax
from jax.experimental import pallas as pl
from jax.experimental.pallas import tpu as pltpu

_VMEM_LIMIT = 48 * 1024 * 1024  # below physical VMEM on v5e/v6e/v7x


def _pick_tile(n, cap=256):
    """Row-tile size: full extent if small, else largest divisor <= cap."""
    if n <= cap:
        return n
    for c in (256, 128, 64, 32, 16, 8):
        if n % c == 0:
            return c
    return n


def _project_heads_kernel(q_ref, k_ref, wq_ref, bq_ref, wk_ref, bk_ref,
                          qh_ref, kh_ref, *, num_heads, d_k, scale):
    q = q_ref[0]                                  # [TL, D] f32
    k = k_ref[0]                                  # [TL, D] f32
    # Full-width projections: [TL, D] @ [D, D] (vs. old per-head [D, d_k]).
    qp = jnp.dot(q, wq_ref[...], preferred_element_type=jnp.float32) + bq_ref[...]
    kp = jnp.dot(k, wk_ref[...], preferred_element_type=jnp.float32) + bk_ref[...]
    # Fold the 1/sqrt(d_k) score scale into qh (same for every head).
    qp = (qp * jnp.float32(scale)).astype(jnp.bfloat16)
    kp = kp.astype(jnp.bfloat16)
    # Split heads with static lane slices; store head-major so the attention
    # kernel can tile per head with a full-extent last block dim (= d_k).
    for h in range(num_heads):
        sl = slice(h * d_k, (h + 1) * d_k)
        qh_ref[0, h] = qp[:, sl]
        kh_ref[0, h] = kp[:, sl]


def _attention_kernel(qh_ref, kh_ref, bias_ref, out_ref):
    qh = qh_ref[0, 0]                             # [TQ, d_k] bf16 (pre-scaled)
    kh = kh_ref[0, 0]                             # [L,  d_k] bf16
    # Contract last dims of both operands: feeds the MXU directly (no XLU
    # transpose), bf16 inputs with f32 accumulation.
    scores = lax.dot_general(qh, kh, (((1,), (1,)), ((), ())),
                             preferred_element_type=jnp.float32)   # [TQ, L]
    scores = scores + bias_ref[0, 0]              # host-folded mask + syntax
    # Numerically stable softmax over keys, all f32.
    mx = jnp.max(scores, axis=-1, keepdims=True)
    e = jnp.exp(scores - mx)
    p = e * pl.reciprocal(jnp.sum(e, axis=-1, keepdims=True), approx=True)
    # TODO(synk): nn.Dropout(p=0.1) is identity in eval mode; omitted here.
    out_ref[0, 0] = p.astype(out_ref.dtype)


def multi_head_attention(query, key, vm, syntax_matrix, mask, params, num_heads,
                         *, out_dtype=jnp.float32):
    """Returns attention probabilities [B, H, L, L] (matches the PyTorch forward)."""
    del vm  # vm_matrix is passed but never used in the reference attention().
    B, L, D = query.shape
    d_k = D // num_heads

    # mirrors `mask = mask[:, :, :query.size(1)]` + unsqueeze(1); fold the
    # masked_fill(-1e9) together with the syntax bias into one additive term.
    add_mask = jnp.where(mask[:, :, :L] == 0, jnp.float32(-1.0e9), jnp.float32(0.0))
    bias = (syntax_matrix + add_mask[:, :, None, :]).astype(jnp.float32)   # [B,1,L,L]

    wq, wk = params["wq"], params["wk"]
    bq = params["bq"].reshape(1, D)
    bk = params["bk"].reshape(1, D)

    # ---- Kernel 1: full-width Q/K projections, head-major bf16 outputs ----
    tl = _pick_tile(L)
    proj_kernel = functools.partial(_project_heads_kernel, num_heads=num_heads,
                                    d_k=d_k, scale=1.0 / math.sqrt(d_k))
    qh, kh = pl.pallas_call(
        proj_kernel,
        out_shape=(jax.ShapeDtypeStruct((B, num_heads, L, d_k), jnp.bfloat16),
                   jax.ShapeDtypeStruct((B, num_heads, L, d_k), jnp.bfloat16)),
        grid_spec=pltpu.PrefetchScalarGridSpec(
            num_scalar_prefetch=0,
            grid=(B, L // tl),
            in_specs=[
                pl.BlockSpec((1, tl, D), lambda b, t: (b, t, 0)),   # query
                pl.BlockSpec((1, tl, D), lambda b, t: (b, t, 0)),   # key
                pl.BlockSpec((D, D), lambda b, t: (0, 0)),          # W_q (full)
                pl.BlockSpec((1, D), lambda b, t: (0, 0)),          # b_q
                pl.BlockSpec((D, D), lambda b, t: (0, 0)),          # W_k (full)
                pl.BlockSpec((1, D), lambda b, t: (0, 0)),          # b_k
            ],
            out_specs=(
                pl.BlockSpec((1, num_heads, tl, d_k), lambda b, t: (b, 0, t, 0)),
                pl.BlockSpec((1, num_heads, tl, d_k), lambda b, t: (b, 0, t, 0)),
            ),
        ),
        compiler_params=pltpu.CompilerParams(
            dimension_semantics=("parallel", "parallel"),
            vmem_limit_bytes=_VMEM_LIMIT),
    )(query, key, wq, bq, wk, bk)

    # ---- Kernel 2: scores + bias + softmax, tiled over query rows ----
    tq = _pick_tile(L)
    nq = L // tq
    attn = pl.pallas_call(
        _attention_kernel,
        out_shape=jax.ShapeDtypeStruct((B, num_heads, L, L), out_dtype),
        grid_spec=pltpu.PrefetchScalarGridSpec(
            num_scalar_prefetch=0,
            # heads innermost: the large [TQ, L] bias tile is reused H times.
            grid=(B, nq, num_heads),
            in_specs=[
                pl.BlockSpec((1, 1, tq, d_k), lambda b, qi, h: (b, h, qi, 0)),  # qh
                pl.BlockSpec((1, 1, L, d_k),  lambda b, qi, h: (b, h, 0, 0)),   # kh
                pl.BlockSpec((1, 1, tq, L),   lambda b, qi, h: (b, 0, qi, 0)),  # bias
            ],
            out_specs=pl.BlockSpec((1, 1, tq, L), lambda b, qi, h: (b, h, qi, 0)),
        ),
        compiler_params=pltpu.CompilerParams(
            dimension_semantics=("parallel", "parallel", "parallel"),
            vmem_limit_bytes=_VMEM_LIMIT),
    )(qh, kh, bias)
    return attn


def _reference(query, key, syntax_matrix, mask, params, num_heads):
    """Pure-JAX reference mirroring the PyTorch forward (eval mode), all f32."""
    B, L, D = query.shape
    d_k = D // num_heads
    m = mask[:, :, :L][:, None, :, :]                               # [B,1,1,L]
    q = (query @ params["wq"] + params["bq"]).reshape(B, L, num_heads, d_k)
    k = (key @ params["wk"] + params["bk"]).reshape(B, L, num_heads, d_k)
    q = q.transpose(0, 2, 1, 3)
    k = k.transpose(0, 2, 1, 3)
    scores = (q @ jnp.swapaxes(k, -1, -2)) / math.sqrt(d_k)
    scores = jnp.where(m == 0, -1.0e9, scores)
    scores = scores + syntax_matrix
    return jax.nn.softmax(scores, axis=-1)


if __name__ == "__main__":
    B, L, D, H = 2, 8, 32, 4
    L_FULL = 16  # mask comes in longer and is sliced to L, as in the reference

    root = jax.random.PRNGKey(0)
    ks = jax.random.split(root, 9)

    query = jax.random.normal(ks[0], (B, L, D), jnp.float32)
    key_x = jax.random.normal(ks[1], (B, L, D), jnp.float32)
    syntax = jax.random.normal(ks[2], (B, 1, L, L), jnp.float32)
    vm = jax.random.normal(ks[3], (B, 1, L, L), jnp.float32)   # unused, like the reference
    mask = (jax.random.uniform(ks[4], (B, 1, L_FULL)) > 0.2).astype(jnp.float32)

    bound = 1.0 / math.sqrt(D)  # nn.Linear-style deterministic uniform init
    params = {
        "wq": jax.random.uniform(ks[5], (D, D), jnp.float32, -bound, bound),
        "bq": jax.random.uniform(ks[6], (D,), jnp.float32, -bound, bound),
        "wk": jax.random.uniform(ks[7], (D, D), jnp.float32, -bound, bound),
        "bk": jax.random.uniform(ks[8], (D,), jnp.float32, -bound, bound),
    }

    out = multi_head_attention(query, key_x, vm, syntax, mask, params, H)
    out = jax.block_until_ready(out)

    assert out.shape == (B, H, L, L), out.shape
    ref = _reference(query, key_x, syntax, mask, params, H)
    # bf16 MXU inputs -> loosened tolerance vs. the all-f32 reference.
    err = float(jnp.max(jnp.abs(out - ref)))
    assert jnp.allclose(out, ref, rtol=2e-2, atol=2e-2), err

    print("KERNEL_OK")
</pallas_src>

<mosaic_0001>
module attributes {stable_mosaic.version = 11 : i64} {
  func.func @_project_heads_kernel(%arg0: i32, %arg1: i32, %arg2: memref<1x8x32xf32, #tpu.memory_space<vmem>>, %arg3: memref<1x8x32xf32, #tpu.memory_space<vmem>>, %arg4: memref<32x32xf32, #tpu.memory_space<vmem>>, %arg5: memref<1x32xf32, #tpu.memory_space<vmem>>, %arg6: memref<32x32xf32, #tpu.memory_space<vmem>>, %arg7: memref<1x32xf32, #tpu.memory_space<vmem>>, %arg8: memref<1x4x8x8xbf16, #tpu.memory_space<vmem>>, %arg9: memref<1x4x8x8xbf16, #tpu.memory_space<vmem>>) attributes {dimension_semantics = [#tpu.dimension_semantics<parallel>, #tpu.dimension_semantics<parallel>], iteration_bounds = array<i64: 2, 1>, scalar_prefetch = 0 : i64, scratch_operands = 0 : i64, tpu.core_type = #tpu.core_type<tc>, window_params = [{transform_indices = @transform_0, window_bounds = array<i64: 1, 8, 32>}, {transform_indices = @transform_1, window_bounds = array<i64: 1, 8, 32>}, {pipeline_mode = #tpu.pipeline_mode<synchronous>, transform_indices = @transform_2, window_bounds = array<i64: 32, 32>}, {pipeline_mode = #tpu.pipeline_mode<synchronous>, transform_indices = @transform_3, window_bounds = array<i64: 1, 32>}, {pipeline_mode = #tpu.pipeline_mode<synchronous>, transform_indices = @transform_4, window_bounds = array<i64: 32, 32>}, {pipeline_mode = #tpu.pipeline_mode<synchronous>, transform_indices = @transform_5, window_bounds = array<i64: 1, 32>}, {transform_indices = @transform_6, window_bounds = array<i64: 1, 4, 8, 8>}, {transform_indices = @transform_7, window_bounds = array<i64: 1, 4, 8, 8>}]} {
    %c0 = arith.constant 0 : index
    %c0_0 = arith.constant 0 : index
    %c0_1 = arith.constant 0 : index
    %0 = vector.load %arg2[%c0, %c0_0, %c0_1] : memref<1x8x32xf32, #tpu.memory_space<vmem>>, vector<1x8x32xf32>
    %1 = vector.shape_cast %0 : vector<1x8x32xf32> to vector<8x32xf32>
    %c0_2 = arith.constant 0 : index
    %c0_3 = arith.constant 0 : index
    %c0_4 = arith.constant 0 : index
    %2 = vector.load %arg3[%c0_2, %c0_3, %c0_4] : memref<1x8x32xf32, #tpu.memory_space<vmem>>, vector<1x8x32xf32>
    %3 = vector.shape_cast %2 : vector<1x8x32xf32> to vector<8x32xf32>
    %c0_5 = arith.constant 0 : index
    %c0_6 = arith.constant 0 : index
    %4 = vector.load %arg4[%c0_5, %c0_6] : memref<32x32xf32, #tpu.memory_space<vmem>>, vector<32x32xf32>
    %cst = arith.constant dense<0.000000e+00> : vector<8x32xf32>
    %5 = tpu.matmul %1, %4, %cst {dimension_numbers = #tpu.dot_dimension_numbers<[1], [0], [0], [1], [0, 0, 1, 1], [], []>} : vector<8x32xf32>, vector<32x32xf32>, vector<8x32xf32> -> vector<8x32xf32>
    %c0_7 = arith.constant 0 : index
    %c0_8 = arith.constant 0 : index
    %6 = vector.load %arg5[%c0_7, %c0_8] : memref<1x32xf32, #tpu.memory_space<vmem>>, vector<1x32xf32>
    %7 = vector.broadcast %6 : vector<1x32xf32> to vector<8x32xf32>
    %8 = arith.addf %5, %7 : vector<8x32xf32>
    %c0_9 = arith.constant 0 : index
    %c0_10 = arith.constant 0 : index
    %9 = vector.load %arg6[%c0_9, %c0_10] : memref<32x32xf32, #tpu.memory_space<vmem>>, vector<32x32xf32>
    %cst_11 = arith.constant dense<0.000000e+00> : vector<8x32xf32>
    %10 = tpu.matmul %3, %9, %cst_11 {dimension_numbers = #tpu.dot_dimension_numbers<[1], [0], [0], [1], [0, 0, 1, 1], [], []>} : vector<8x32xf32>, vector<32x32xf32>, vector<8x32xf32> -> vector<8x32xf32>
    %c0_12 = arith.constant 0 : index
    %c0_13 = arith.constant 0 : index
    %11 = vector.load %arg7[%c0_12, %c0_13] : memref<1x32xf32, #tpu.memory_space<vmem>>, vector<1x32xf32>
    %12 = vector.broadcast %11 : vector<1x32xf32> to vector<8x32xf32>
    %13 = arith.addf %10, %12 : vector<8x32xf32>
    %cst_14 = arith.constant 0.353553385 : f32
    %14 = vector.broadcast %cst_14 : f32 to vector<8x32xf32>
    %15 = arith.mulf %8, %14 : vector<8x32xf32>
    %16 = arith.truncf %15 : vector<8x32xf32> to vector<8x32xbf16>
    %17 = arith.truncf %13 : vector<8x32xf32> to vector<8x32xbf16>
    %18 = vector.extract_strided_slice %16 {offsets = [0, 0], sizes = [8, 8], strides = [1, 1]} : vector<8x32xbf16> to vector<8x8xbf16>
    %c0_15 = arith.constant 0 : index
    %c0_16 = arith.constant 0 : index
    %c0_17 = arith.constant 0 : index
    %c0_18 = arith.constant 0 : index
    %19 = vector.load %arg8[%c0_15, %c0_16, %c0_17, %c0_18] : memref<1x4x8x8xbf16, #tpu.memory_space<vmem>>, vector<1x1x8x8xbf16>
    %20 = vector.shape_cast %19 : vector<1x1x8x8xbf16> to vector<8x8xbf16>
    %21 = vector.shape_cast %18 : vector<8x8xbf16> to vector<1x1x8x8xbf16>
    tpu.vector_store %arg8[%c0_15, %c0_16, %c0_17, %c0_18], %21 {strides = array<i32>} : memref<1x4x8x8xbf16, #tpu.memory_space<vmem>>, vector<1x1x8x8xbf16>,
    %22 = vector.extract_strided_slice %17 {offsets = [0, 0], sizes = [8, 8], strides = [1, 1]} : vector<8x32xbf16> to vector<8x8xbf16>
    %c0_19 = arith.constant 0 : index
    %c0_20 = arith.constant 0 : index
    %c0_21 = arith.constant 0 : index
    %c0_22 = arith.constant 0 : index
    %23 = vector.load %arg9[%c0_19, %c0_20, %c0_21, %c0_22] : memref<1x4x8x8xbf16, #tpu.memory_space<vmem>>, vector<1x1x8x8xbf16>
    %24 = vector.shape_cast %23 : vector<1x1x8x8xbf16> to vector<8x8xbf16>
    %25 = vector.shape_cast %22 : vector<8x8xbf16> to vector<1x1x8x8xbf16>
    tpu.vector_store %arg9[%c0_19, %c0_20, %c0_21, %c0_22], %25 {strides = array<i32>} : memref<1x4x8x8xbf16, #tpu.memory_space<vmem>>, vector<1x1x8x8xbf16>,
    %26 = vector.extract_strided_slice %16 {offsets = [0, 8], sizes = [8, 8], strides = [1, 1]} : vector<8x32xbf16> to vector<8x8xbf16>
    %c0_23 = arith.constant 0 : index
    %c1 = arith.constant 1 : index
    %c0_24 = arith.constant 0 : index
    %c0_25 = arith.constant 0 : index
    %27 = vector.load %arg8[%c0_23, %c1, %c0_24, %c0_25] : memref<1x4x8x8xbf16, #tpu.memory_space<vmem>>, vector<1x1x8x8xbf16>
    %28 = vector.shape_cast %27 : vector<1x1x8x8xbf16> to vector<8x8xbf16>
    %29 = vector.shape_cast %26 : vector<8x8xbf16> to vector<1x1x8x8xbf16>
    tpu.vector_store %arg8[%c0_23, %c1, %c0_24, %c0_25], %29 {strides = array<i32>} : memref<1x4x8x8xbf16, #tpu.memory_space<vmem>>, vector<1x1x8x8xbf16>,
    %30 = vector.extract_strided_slice %17 {offsets = [0, 8], sizes = [8, 8], strides = [1, 1]} : vector<8x32xbf16> to vector<8x8xbf16>
    %c0_26 = arith.constant 0 : index
    %c1_27 = arith.constant 1 : index
    %c0_28 = arith.constant 0 : index
    %c0_29 = arith.constant 0 : index
    %31 = vector.load %arg9[%c0_26, %c1_27, %c0_28, %c0_29] : memref<1x4x8x8xbf16, #tpu.memory_space<vmem>>, vector<1x1x8x8xbf16>
    %32 = vector.shape_cast %31 : vector<1x1x8x8xbf16> to vector<8x8xbf16>
    %33 = vector.shape_cast %30 : vector<8x8xbf16> to vector<1x1x8x8xbf16>
    tpu.vector_store %arg9[%c0_26, %c1_27, %c0_28, %c0_29], %33 {strides = array<i32>} : memref<1x4x8x8xbf16, #tpu.memory_space<vmem>>, vector<1x1x8x8xbf16>,
    %34 = vector.extract_strided_slice %16 {offsets = [0, 16], sizes = [8, 8], strides = [1, 1]} : vector<8x32xbf16> to vector<8x8xbf16>
    %c0_30 = arith.constant 0 : index
    %c2 = arith.constant 2 : index
    %c0_31 = arith.constant 0 : index
    %c0_32 = arith.constant 0 : index
    %35 = vector.load %arg8[%c0_30, %c2, %c0_31, %c0_32] : memref<1x4x8x8xbf16, #tpu.memory_space<vmem>>, vector<1x1x8x8xbf16>
    %36 = vector.shape_cast %35 : vector<1x1x8x8xbf16> to vector<8x8xbf16>
    %37 = vector.shape_cast %34 : vector<8x8xbf16> to vector<1x1x8x8xbf16>
    tpu.vector_store %arg8[%c0_30, %c2, %c0_31, %c0_32], %37 {strides = array<i32>} : memref<1x4x8x8xbf16, #tpu.memory_space<vmem>>, vector<1x1x8x8xbf16>,
    %38 = vector.extract_strided_slice %17 {offsets = [0, 16], sizes = [8, 8], strides = [1, 1]} : vector<8x32xbf16> to vector<8x8xbf16>
    %c0_33 = arith.constant 0 : index
    %c2_34 = arith.constant 2 : index
    %c0_35 = arith.constant 0 : index
    %c0_36 = arith.constant 0 : index
    %39 = vector.load %arg9[%c0_33, %c2_34, %c0_35, %c0_36] : memref<1x4x8x8xbf16, #tpu.memory_space<vmem>>, vector<1x1x8x8xbf16>
    %40 = vector.shape_cast %39 : vector<1x1x8x8xbf16> to vector<8x8xbf16>
    %41 = vector.shape_cast %38 : vector<8x8xbf16> to vector<1x1x8x8xbf16>
    tpu.vector_store %arg9[%c0_33, %c2_34, %c0_35, %c0_36], %41 {strides = array<i32>} : memref<1x4x8x8xbf16, #tpu.memory_space<vmem>>, vector<1x1x8x8xbf16>,
    %42 = vector.extract_strided_slice %16 {offsets = [0, 24], sizes = [8, 8], strides = [1, 1]} : vector<8x32xbf16> to vector<8x8xbf16>
    %c0_37 = arith.constant 0 : index
    %c3 = arith.constant 3 : index
    %c0_38 = arith.constant 0 : index
    %c0_39 = arith.constant 0 : index
    %43 = vector.load %arg8[%c0_37, %c3, %c0_38, %c0_39] : memref<1x4x8x8xbf16, #tpu.memory_space<vmem>>, vector<1x1x8x8xbf16>
    %44 = vector.shape_cast %43 : vector<1x1x8x8xbf16> to vector<8x8xbf16>
    %45 = vector.shape_cast %42 : vector<8x8xbf16> to vector<1x1x8x8xbf16>
    tpu.vector_store %arg8[%c0_37, %c3, %c0_38, %c0_39], %45 {strides = array<i32>} : memref<1x4x8x8xbf16, #tpu.memory_space<vmem>>, vector<1x1x8x8xbf16>,
    %46 = vector.extract_strided_slice %17 {offsets = [0, 24], sizes = [8, 8], strides = [1, 1]} : vector<8x32xbf16> to vector<8x8xbf16>
    %c0_40 = arith.constant 0 : index
    %c3_41 = arith.constant 3 : index
    %c0_42 = arith.constant 0 : index
    %c0_43 = arith.constant 0 : index
    %47 = vector.load %arg9[%c0_40, %c3_41, %c0_42, %c0_43] : memref<1x4x8x8xbf16, #tpu.memory_space<vmem>>, vector<1x1x8x8xbf16>
    %48 = vector.shape_cast %47 : vector<1x1x8x8xbf16> to vector<8x8xbf16>
    %49 = vector.shape_cast %46 : vector<8x8xbf16> to vector<1x1x8x8xbf16>
    tpu.vector_store %arg9[%c0_40, %c3_41, %c0_42, %c0_43], %49 {strides = array<i32>} : memref<1x4x8x8xbf16, #tpu.memory_space<vmem>>, vector<1x1x8x8xbf16>,
    return
  }
  func.func @transform_0(%arg0: i32, %arg1: i32) -> (i32, i32, i32) {
    %c0_i32 = arith.constant 0 : i32
    %c0_i32_0 = arith.constant 0 : i32
    return %arg0, %arg1, %c0_i32 : i32, i32, i32
  }
  func.func @transform_1(%arg0: i32, %arg1: i32) -> (i32, i32, i32) {
    %c0_i32 = arith.constant 0 : i32
    %c0_i32_0 = arith.constant 0 : i32
    return %arg0, %arg1, %c0_i32 : i32, i32, i32
  }
  func.func @transform_2(%arg0: i32, %arg1: i32) -> (i32, i32) {
    %c0_i32 = arith.constant 0 : i32
    %c0_i32_0 = arith.constant 0 : i32
    %c0_i32_1 = arith.constant 0 : i32
    return %c0_i32, %c0_i32_0 : i32, i32
  }
  func.func @transform_3(%arg0: i32, %arg1: i32) -> (i32, i32) {
    %c0_i32 = arith.constant 0 : i32
    %c0_i32_0 = arith.constant 0 : i32
    %c0_i32_1 = arith.constant 0 : i32
    return %c0_i32, %c0_i32_0 : i32, i32
  }
  func.func @transform_4(%arg0: i32, %arg1: i32) -> (i32, i32) {
    %c0_i32 = arith.constant 0 : i32
    %c0_i32_0 = arith.constant 0 : i32
    %c0_i32_1 = arith.constant 0 : i32
    return %c0_i32, %c0_i32_0 : i32, i32
  }
  func.func @transform_5(%arg0: i32, %arg1: i32) -> (i32, i32) {
    %c0_i32 = arith.constant 0 : i32
    %c0_i32_0 = arith.constant 0 : i32
    %c0_i32_1 = arith.constant 0 : i32
    return %c0_i32, %c0_i32_0 : i32, i32
  }
  func.func @transform_6(%arg0: i32, %arg1: i32) -> (i32, i32, i32, i32) {
    %c0_i32 = arith.constant 0 : i32
    %c0_i32_0 = arith.constant 0 : i32
    %c0_i32_1 = arith.constant 0 : i32
    return %arg0, %c0_i32, %arg1, %c0_i32_0 : i32, i32, i32, i32
  }
  func.func @transform_7(%arg0: i32, %arg1: i32) -> (i32, i32, i32, i32) {
    %c0_i32 = arith.constant 0 : i32
    %c0_i32_0 = arith.constant 0 : i32
    %c0_i32_1 = arith.constant 0 : i32
    return %arg0, %c0_i32, %arg1, %c0_i32_0 : i32, i32, i32, i32
  }
}

</mosaic_0001>

<bundles_post_ra>
// kernel: tpu_custom_call.1
= control target key start
LH: loop header
LB: loop body
LE: loop exit
PB: predicated region body
PF: predicated region fallthrough
CT: control target
= control target key end

     0   :  { %s1335_s0 = inlined_call_operand.hbm [shape: f32[2,8,32], index: 0, kind: input, shape index: {}]   ;;  %s1336_s1 = inlined_call_operand.hbm [shape: f32[2,8,32], index: 1, kind: input, shape index: {}]   ;;  %s1337_s2 = inlined_call_operand.hbm [shape: f32[32,32], index: 2, kind: input, shape index: {}]   ;;  %s1338_s3 = inlined_call_operand.vmem [shape: f32[1,32], index: 3, kind: input, shape index: {}]   ;;  %s1339_s4 = inlined_call_operand.hbm [shape: f32[32,32], index: 4, kind: input, shape index: {}]   ;;  %s1340_s5 = inlined_call_operand.vmem [shape: f32[1,32], index: 5, kind: input, shape index: {}]   ;;  %s1341_s6 = inlined_call_operand.hbm [shape: bf16[2,4,8,8], index: 6, kind: output, shape index: {0}]   ;;  %s1342_s7 = inlined_call_operand.hbm [shape: bf16[2,4,8,8], index: 7, kind: output, shape index: {1}]  }
   0x1   :  { %1348 = sst [smem:[#allocation25_spill]] %s1337_s2 }
   0x2   :  { %1349 = sst [smem:[#allocation26_spill]] %s1339_s4 }
   0x3   :  { %13 = vsyncpa [#allocation3], 0 }
   0x4   :  { %15 = vsyncpa [#allocation3 + $0x1], 0 }
   0x5   :  { %16 = vsyncpa [#allocation6], 0 }
   0x6   :  { %18 = vsyncpa [#allocation6 + $0x1], 0 }
   0x7   :  { %19 = vsyncpa [#allocation9], 0 }
   0x8   :  { %20 = vsyncpa [#allocation4], 0 }
   0x9   :  { %22 = vsyncpa [#allocation4 + $0x1], 0 }
   0xa   :  { %23 = vsyncpa [#allocation12], 0 }
   0xb   :  { %25 = vsyncpa [#allocation12 + $0x1], 0  ;;  %s1140_s24 = smov 0   ;;  %s1142_s25 = smov 0  }
   0xc   :  { %s1144_s26 = smov 0   ;;  %s1146_s27 = smov 0  }
   0xd   :  { %s1148_s28 = smov 0   ;;  %s1150_s29 = smov 0  }
   0xe LB: > { %1350 = sst [smem:[#allocation19_spill]] %s1069_s24  ;;  %s1171_s30 = sadd.s32 4294967295, %s1089_s29   ;;  %s1089_s29 = sphi %s1150_s29, %s31_s29   ;;  %s1085_s28 = sphi %s1148_s28, %s1368_s28   ;;  %s1081_s27 = sphi %s1146_s27, %s1367_s27   ;;  %s1077_s26 = sphi %s1144_s26, %s1366_s26   ;;  %s1073_s25 = sphi %s1142_s25, %s1370_s25   ;;  %s1069_s24 = sphi %s1140_s24, %s1369_s24  }
   0xf   : > { %1351 = sst [smem:[#allocation20_spill]] %s1077_s26  ;;  %p708_p0 = scmp.ge.s32.totalorder %s1089_s29, 1 }
  0x10   : > { %1352 = sst [smem:[#allocation21_spill]] %s1085_s28  ;;  %p66_p1 = scmp.eq.s32.totalorder %s1171_s30, 0 }
  0x11   : > { %p244_p2 = scmp.lt.s32.totalorder %s1089_s29, 3  ;;  %s1353_s2 = sld [smem:[#allocation25_spill]] }
  0x12   : > { %s1091_s12 = smov [#allocation7]   ;;  %p711_p6 = scmp.ge.s32.totalorder %s1089_s29, 2 }
  0x13   : > { %p1179_p3 = pnand %p708_p0, %p244_p2  ;;  %s257_s13 = sshll.u32 %s1091_s12, 4  ;;  %s258_s13 = int_to_ptr.vmem [resolvable:$true] %s257_s13 }
  0x14   : > { %s1355_s4 = sld [smem:[#allocation26_spill]]  ;;  %s1092_s17 = smov 128  }
  0x15   : > { %p757_p4 = pneg %p1179_p3  ;;  %s1093_s18 = smov 8  }
  0x16   : > { %s1094_s19 = smov [#allocation8]   ;;  %s707_s21 = sadd.s32 4294967294, %s1089_s29  }
  0x17   : > { %s255_s10 = sshll.u32 %s1353_s2, 4  ;;  %p758_p5 = pnand %p757_p4, %p66_p1  ;;  %s256_s10 = int_to_ptr.hbm [resolvable:$true] %s255_s10 }
  0x18   : > { %s274_s20 = sshll.u32 %s1094_s19, 4  ;;  %s43_s22 = sadd.s32 1, %s1085_s28  ;;  %s275_s20 = int_to_ptr.vmem [resolvable:$true] %s274_s20 }
  0x19   : > { %760 = dma.hbm_to_vmem [thread:$0]  (!%p758_p5), %s256_s10, 512, %s258_s13, [#allocation6], %s1092_s17, %s1092_s17, %s1093_s18  }
  0x1a   : > { %s272_s16 = sshll.u32 %s1355_s4, 4  ;;  %p45_p7 = scmp.ge.s32.totalorder %s43_s22, 2  ;;  %s273_s16 = int_to_ptr.hbm [resolvable:$true] %s272_s16 }
  0x1b   : > { %763 = dma.hbm_to_vmem [thread:$0]  (!%p758_p5), %s273_s16, 512, %s275_s20, [#allocation9], %s1092_s17, %s1092_s17, %s1093_s18  }
  0x1c   : > { %s52_s23 = sadd.s32 1, %s1077_s26  ;;  %p59_p8 = scmp.ne.s32.totalorder %s1077_s26, %s1073_s25 }
  0x1d   : > { %p60_p9 = scmp.eq.s32.totalorder %s1089_s29, 0  ;;  %s1372_s22 = smov (%p45_p7, %s43_s22), 0 }
  0x1e   : > { %1356 = sst [smem:[#allocation22_spill]] %s1372_s22  ;;  %p65_p11 = scmp.ne.s32.totalorder %s1073_s25, %s1069_s24 }
  0x1f   : > { %p1199_p10 = por %p60_p9, %p59_p8  ;;  %s47_s9 = ssub.s32 %s1085_s28, %s1372_s22 }
  0x20   : > { %p203_p12 = scmp.eq.s32.totalorder %s1171_s30, 1  ;;  %p50_p13 = scmp.eq.s32.totalorder %s47_s9, 0 }
  0x21   : > { %p1210_p0 = por %p66_p1, %p65_p11  ;;  %p209_p4 = scmp.eq.s32.totalorder %s707_s21, 1 }
  0x22   : > { %p1214_p2 = por %p203_p12, %p59_p8  ;;  %p780_p7 = scmp.lt.s32.totalorder %s1089_s29, 2 }
  0x23   : > { %s1219_s13 = scalar_select %p50_p13, %s1077_s26, %s52_s23  }
  0x24   : > { %p1221_p5 = por %p209_p4, %p65_p11  ;;  %s291_s15 = sand.u32 1, %s1077_s26  }
  0x25   : > { %1360 = sst [smem:[#allocation23_spill]] %s1219_s13  ;;  %s713_s16 = sshll.u32 %s1085_s28, 3 }
  0x26   : > { %s1361_s14 = scalar_select %p1221_p5, 1, 0 }
  0x27   : > { %s712_s17 = sshll.u32 %s291_s15, 3  ;;  %s300_s20 = scalar_lea.hbm %s1335_s0, %s713_s16 }
  0x28   : > { %1362 = sst [smem:[#allocation24_spill]] %s1361_s14  ;;  %s302_s9 = sshll.u32 %s300_s20, 4  ;;  %s303_s9 = int_to_ptr.hbm [resolvable:$true] %s302_s9 }
  0x29   : > { %s295_s2 = scalar_lea.vmem [#allocation2], %s712_s17  ;;  %p765_p8 = pnand %p780_p7, %p1199_p10 }
  0x2a   : > { %s304_s4 = sshll.u32 %s295_s2, 4  ;;  %s320_s22 = scalar_lea.hbm %s1336_s1, %s713_s16  ;;  %s305_s4 = int_to_ptr.vmem [resolvable:$true] %s304_s4 }
  0x2b   : > { %s311_s13 = sand.u32 1, %s1089_s29   ;;  %s292_s14 = scalar_lea.sflag [#allocation3], %s291_s15 }
  0x2c   : > { %767 = dma.hbm_to_vmem [thread:$0]  (!%p765_p8), %s303_s9, 128, %s305_s4, %s292_s14  }
  0x2d   : > { %s322_s28 = sshll.u32 %s320_s22, 4  ;;  %s315_s26 = scalar_lea.vmem [#allocation5], %s712_s17  ;;  %s323_s28 = int_to_ptr.hbm [resolvable:$true] %s322_s28 }
  0x2e   : > { %s324_s24 = sshll.u32 %s315_s26, 4  ;;  %s312_s18 = scalar_lea.sflag [#allocation6], %s311_s13  ;;  %s325_s24 = int_to_ptr.vmem [resolvable:$true] %s324_s24 }
  0x2f   : > { %770 = dma.hbm_to_vmem [thread:$0]  (!%p765_p8), %s323_s28, 128, %s325_s24, %s312_s18  }
  0x30   : > { %333 = sbr.rel (%p1179_p3) target bundleno = 334 (0x14e), region = 44  ;;  %s1240_s2 = sand.u32 (!%p1179_p3), 1, %s1073_s25  }
  0x31   : > { %s717_s8 = sshll.u32 (!%p1179_p3), %s1240_s2, 3  ;;  %s336_s16 = scalar_lea.sflag (!%p1179_p3), [#allocation3], %s1240_s2 }
  0x32   : > { %s339_s15 = scalar_lea.vmem (!%p1179_p3), [#allocation2], %s717_s8 }
  0x35   : > { %1044 = dma.done.wait (%p1210_p0), %s336_s16, 128  }
  0x36   : > { %1046 = vsyncadd (%p1210_p0), %s336_s16, 4294967168  ;;  %s345_s4 = sand.u32 1, %s1171_s30   ;;  %s349_s26 = scalar_lea.vmem [#allocation5], %s717_s8 }
  0x37   : > { %s346_s24 = scalar_lea.sflag [#allocation6], %s345_s4 }
  0x38   : > { %1048 = dma.done.wait (%p1210_p0), %s346_s24, 128  }
  0x39   : > { %1050 = vsyncadd (%p1210_p0), %s346_s24, 4294967168 }
  0x3a   : > { %1052 = dma.done.wait (%p66_p1), [#allocation6], 512  }
  0x3b   : > { %1054 = vsyncadd (%p66_p1), [#allocation6], 4294966784 }
  0x3c   : > { %1056 = dma.done.wait (%p66_p1), [#allocation9], 512  }
  0x3d   : > { %1058 = vsyncadd (%p66_p1), [#allocation9], 4294966784  ;;  %v406_v0 = vld [vmem:[#allocation7 + $0x18] sm:$0xff]  ;;  %v405_v1 = vld [vmem:[#allocation7 + $0x10] sm:$0xff]  ;;  %vm411_vm0 = vcmask 261120   ;;  %s721_s10 = sshll.u32 %s1240_s2, 4 }
  0x3e   : > { %427 = vmatpush.msra.mxu0 %v406_v0  ;;  %v438_v2 = vld [vmem:[#allocation8 + $0x18] sm:$0xff]  ;;  %v404_v3 = vld [vmem:[#allocation7 + $0x8] sm:$0xff]  ;;  %v437_v4 = vld [vmem:[#allocation8 + $0x10] sm:$0xff]  ;;  %vm469_vm1 = vcmask 60416   ;;  %s1268_s13 = scalar_lea.vmem [#allocation11], %s721_s10  ;;  %s393_s14 = scalar_lea.vmem [#allocation10], %s721_s10 }
  0x3f   : > { %458 = vmatpush.msra.mxu1 %v438_v2  ;;  %v436_v5 = vld [vmem:[#allocation8 + $0x8] sm:$0xff]  ;;  %v403_v6 = vld [vmem:[#allocation7] sm:$0xff]  ;;  %v402_v9 = vld [vmem:[%s349_s26] sm:$0xff]  ;;  %s1095_s17 = smov 104   ;;  %s1096_s19 = smov 112  }
  0x40   : > { %428 = vmatpush.msra.mxu0 %v405_v1  ;;  %v401_v7 = vld [vmem:[%s339_s15] sm:$0xff]  ;;  %s1097_s20 = smov 120   ;;  %s739_s9 = sshll.u32 %s1081_s27, 4 }
  0x41   : > { %459 = vmatpush.msra.mxu1 %v437_v4  ;;  %v435_v8 = vld [vmem:[#allocation8] sm:$0xff]  ;;  %s522_s18 = scalar_lea.hbm %s1341_s6, %s739_s9  ;;  %s523_s8 = sshll.u32 %s393_s14, 4  ;;  %s524_s8 = int_to_ptr.vmem [resolvable:$true] %s523_s8 }
  0x42   : > { %429 = vmatpush.msra.mxu0 %v404_v3  ;;  %v841_v10 = vld [vmem:[%s1338_s3] ss:$0 sm:$0xff]  ;;  %s525_s16 = sshll.u32 %s522_s18, 4  ;;  %s540_s24 = scalar_lea.hbm %s1342_s7, %s739_s9  ;;  %s526_s16 = int_to_ptr.hbm [resolvable:$true] %s525_s16 }
  0x43   : > { %460 = vmatpush.msra.mxu1 %v436_v5  ;;  %v842_v11 = vld [vmem:[%s1340_s5] ss:$0 sm:$0xff]  ;;  %s505_s27 = scalar_lea.sflag [#allocation4], %s1240_s2  ;;  %s977_s26 = sshra.s32 %s526_s16, 4  ;;  %s978_s26 = int_to_ptr.hbm [resolvable:$true] %s977_s26 }
  0x44   : > { %430 = vmatpush.msra.mxu0 %v403_v6  ;;  %s979_s28 = scalar_lea.hbm %s978_s26, 16  ;;  %s983_s22 = scalar_lea.hbm %s1341_s6, 32 }
  0x45   : > { %723 = vmatmul.msk.f32.vlgmr.msra.gmra.mxu0 %vm411_vm0, %v401_v7  ;;  %461 = vmatpush.msra.mxu1 %v435_v8  ;;  %p980_p1 = scmp.ne.s32.totalorder %s978_s26, %s979_s28  ;;  %p984_p10 = scmp.lt.s32.totalorder %s978_s26, %s1341_s6 }
  0x46   : > { %724 = vmatmul.msk.f32.vlgmr.msra.gmra.mxu1 %vm411_vm0, %v402_v9  ;;  %p985_p11 = scmp.lt.s32.totalorder %s983_s22, %s979_s28 }
  0x47   : > { %p981_p3 = pnand %p980_p1, %p1214_p2 }
  0x48   : > { %p986_p12 = por %p985_p11, %p984_p10 }
  0x49   : > { %p982_p9 = pneg %p981_p3 }
  0x4b   : > { %p987_p13 = pnand %p986_p12, %p982_p9 }
  0xc2   : > { %v432_v12 = vpop.f32.mrf.mxu0 }
  0xc3   : > { %v433_v13 = vadd.f32 %v841_v10, %v432_v12  ;;  %v463_v14 = vpop.f32.mrf.mxu1 }
  0xc4   : > { %v464_v15 = vadd.f32 %v842_v11, %v463_v14 }
  0xc5   : > { %v466_v16 = vmul.f32 0.35355338, %v433_v13 }
  0xc6   : > { %v468_v17 = vpack.c.bf16 %v464_v15, %v464_v15 }
  0xc7   : > { %v467_v18 = vpack.c.bf16 %v466_v16, %v466_v16 }
  0xc8   : > { %471 = vst.msk [vmem:[%s1268_s13] sm:$0xf] %vm469_vm1, %v468_v17 }
  0xc9   : > { %470 = vst.msk [vmem:[%s393_s14] sm:$0xf] %vm469_vm1, %v467_v18  ;;  %494 = vrot.lane.b32.xlu2 %v467_v18, %s1095_s17  ;;  %484 = vrot.lane.b32.xlu1 %v467_v18, %s1096_s19 }
  0xca   : > { %473 = vrot.lane.b32.xlu0 %v467_v18, %s1097_s20 }
  0xd1   : > { %499 = vrot.lane.b32.xlu2 %v468_v17, %s1095_s17  ;;  %489 = vrot.lane.b32.xlu1 %v468_v17, %s1096_s19 }
  0xd2   : > { %479 = vrot.lane.b32.xlu0 %v468_v17, %s1097_s20 }
 0x123   : > { %v495_v19 = vpop.permute.xlu2 %494 }
 0x124   : > { %729 = vst.msk [vmem:[%s393_s14 + $0xc] sm:$0xf] %vm469_vm1, %v495_v19 }
 0x12b   : > { %v500_v20 = vpop.permute.xlu2 %499 }
 0x12c   : > { %730 = vst.msk [vmem:[%s1268_s13 + $0xc] sm:$0xf] %vm469_vm1, %v500_v20 }
 0x13b   : > { %v485_v21 = vpop.permute.xlu1 %484 }
 0x13c   : > { %727 = vst.msk [vmem:[%s393_s14 + $0x8] sm:$0xf] %vm469_vm1, %v485_v21  ;;  %v474_v22 = vpop.permute.xlu0 %473 }
 0x13d   : > { %725 = vst.msk [vmem:[%s393_s14 + $0x4] sm:$0xf] %vm469_vm1, %v474_v22 }
 0x13e   : > { %990 = shalt.err (!%p987_p13)
}
 0x13f   : > { %s1098_s14 = smov 64   ;;  %s1099_s19 = smov 4  }
 0x140   : > { %753 = dma.vmem_to_hbm [thread:$0]  (%p1214_p2), %s524_s8, 256, %s526_s16, %s505_s27, %s1098_s14, %s1098_s14, %s1099_s19  }
 0x141   : > { %s541_s20 = sshll.u32 %s1268_s13, 4  ;;  %s543_s9 = sshll.u32 %s540_s24, 4  ;;  %s542_s20 = int_to_ptr.vmem [resolvable:$true] %s541_s20  ;;  %s544_s9 = int_to_ptr.hbm [resolvable:$true] %s543_s9 }
 0x142   : > { %s510_s21 = scalar_lea.sflag [#allocation12], %s1240_s2  ;;  %s1005_s23 = sshra.s32 %s544_s9, 4  ;;  %s1006_s23 = int_to_ptr.hbm [resolvable:$true] %s1005_s23 }
 0x143   : > { %v490_v23 = vpop.permute.xlu1 %489  ;;  %s1007_s18 = scalar_lea.hbm %s1006_s23, 16  ;;  %s1011_s16 = scalar_lea.hbm %s1342_s7, 32 }
 0x144   : > { %728 = vst.msk [vmem:[%s1268_s13 + $0x8] sm:$0xf] %vm469_vm1, %v490_v23  ;;  %v480_v24 = vpop.permute.xlu0 %479  ;;  %p1008_p0 = scmp.ne.s32.totalorder %s1006_s23, %s1007_s18  ;;  %p1012_p8 = scmp.lt.s32.totalorder %s1006_s23, %s1342_s7 }
 0x145   : > { %726 = vst.msk [vmem:[%s1268_s13 + $0x4] sm:$0xf] %vm469_vm1, %v480_v24  ;;  %p1013_p1 = scmp.lt.s32.totalorder %s1011_s16, %s1007_s18 }
 0x146   : > { %p1009_p4 = pnand %p1008_p0, %p1214_p2 }
 0x147   : > { %p1014_p3 = por %p1013_p1, %p1012_p8 }
 0x148   : > { %p1010_p7 = pneg %p1009_p4 }
 0x14a   : > { %p1015_p9 = pnand %p1014_p3, %p1010_p7 }
 0x14c   : > { %1018 = shalt.err (!%p1015_p9)
}
 0x14d   : > { %754 = dma.vmem_to_hbm [thread:$0]  (%p1214_p2), %s542_s20, 256, %s544_s9, %s510_s21, %s1098_s14, %s1098_s14, %s1099_s19  }
 0x14e PF: > { %s1363_s2 = sld [smem:[#allocation19_spill]]  ;;  %p772_p10 = pnand %p711_p6, %p1221_p5 }
 0x150   : > { %p773_p11 = pneg %p772_p10 }
 0x154   : > { %s558_s27 = sand.u32 1, %s1363_s2  }
 0x155   : > { %s559_s26 = scalar_lea.sflag [#allocation4], %s558_s27 }
 0x156   : > { %1060 = dma.done.wait (%p773_p11), %s559_s26, 256  }
 0x157   : > { %1062 = vsyncadd (%p773_p11), %s559_s26, 4294967040  ;;  %s569_s28 = scalar_lea.sflag [#allocation12], %s558_s27 }
 0x158   : > { %1064 = dma.done.wait (%p773_p11), %s569_s28, 256  }
 0x159   : > { %1066 = vsyncadd (%p773_p11), %s569_s28, 4294967040  ;;  %s31_s29 = sadd.s32 1, %s1089_s29   ;;  %s1365_s12 = sld [smem:[#allocation20_spill]] }
 0x15a   : > { %p28_p12 = scmp.ge.s32.totalorder %s31_s29, 4   ;;  %s1366_s26 = sld [smem:[#allocation23_spill]] }
 0x15b   : > { %s1367_s27 = sld [smem:[#allocation21_spill]]  ;;  %s1369_s24 = smov %s1073_s25 }
 0x15c   : > { %s1368_s28 = sld [smem:[#allocation22_spill]]  ;;  %30 = sbr.rel (!%p28_p12) target bundleno = 14 (0xe), region = 133 }
 0x15f   : > { %s1370_s25 = smov %s1365_s12 }
 0x161   :  { %575 = vsyncpa [#allocation3], 1 }
 0x162   :  { %577 = vsyncpa [#allocation3 + $0x1], 1 }
 0x163   :  { %578 = vsyncpa [#allocation6], 1 }
 0x164   :  { %580 = vsyncpa [#allocation6 + $0x1], 1 }
 0x165   :  { %581 = vsyncpa [#allocation9], 1 }
 0x166   :  { %582 = vsyncpa [#allocation4], 1 }
 0x167   :  { %584 = vsyncpa [#allocation4 + $0x1], 1 }
 0x168   :  { %585 = vsyncpa [#allocation12], 1 }
 0x169   :  { %587 = vsyncpa [#allocation12 + $0x1], 1 }

</bundles_post_ra>
